<compile_context>
chip_gen: v7x
topology: tpu7x:2x2x1
jax: 0.10.0
libtpu: 0.0.40
codegen_flags: <defaults>
</compile_context>

<pallas_src>
import functools

import jax
import jax.numpy as jnp
from jax import lax
from jax.experimental import pallas as pl
from jax.experimental.pallas import tpu as pltpu


# ----------------------------- fused kernel -----------------------------------


def _fused_bottleneck_kernel(xp_ref, xid_ref, w1_ref, b1_ref, w2_ref, b2_ref,
                             w3_ref, b3_ref, o_ref, h1p_ref, col_ref, *,
                             dilation, th, h, w):
    """One (batch, row-tile) step of the fused ResNeXt bottleneck.

    xp_ref : (1, H+2d, W, Cin)   H-padded input image (conv path), compute dtype
    xid_ref: (1, TH, W, Cout)    identity rows of this tile (x dtype, f32)
    w1_ref : (Cin, width)        conv1 weight, BN1 folded, compute dtype
    b1_ref : (1, width)          f32
    w2_ref : (9*width, width)    grouped 3x3 taps, block-diag + K-concat, BN2 folded
    b2_ref : (1, width)          f32
    w3_ref : (width, Cout)       conv3 weight, BN3 folded, compute dtype
    b3_ref : (1, Cout)           f32
    o_ref  : (1, TH, W, Cout)
    h1p_ref: (TH+2d, Wc, width)  VMEM scratch: zero-bordered conv1 output
    col_ref: (TH*W, 9*width)     VMEM scratch: im2col buffer for conv2
    """
    d = dilation
    t = pl.program_id(1)
    width = h1p_ref.shape[-1]
    cin = xp_ref.shape[-1]
    cout = o_ref.shape[-1]
    wc = h1p_ref.shape[1]
    hw = th + 2 * d                                   # rows incl. halo

    # ---- conv1 (1x1) + bn1 + relu over this tile's halo row window ----------
    row0 = pl.multiple_of(t * th, th)
    xw = xp_ref[0, pl.ds(row0, hw), :, :]             # (hw, W, Cin)
    h1 = jnp.dot(xw.reshape(hw * w, cin), w1_ref[...],
                 preferred_element_type=jnp.float32)
    h1 = jnp.maximum(h1 + b1_ref[...], 0.0).reshape(hw, w, width)

    # ---- stage into the zero-bordered VMEM scratch (this IS the conv2 pad) --
    h1p_ref[:, 0:d, :] = jnp.zeros((hw, d, width), h1p_ref.dtype)
    h1p_ref[:, d + w:wc, :] = jnp.zeros((hw, wc - (d + w), width),
                                        h1p_ref.dtype)
    h1p_ref[:, d:d + w, :] = h1.astype(h1p_ref.dtype)

    # Rows of the H-padded frame that are image padding must be exactly zero
    # (conv1 of a zero row is relu(b1) != 0), so overwrite them.
    @pl.when(t == 0)
    def _():
        h1p_ref[0:d, :, :] = jnp.zeros((d, wc, width), h1p_ref.dtype)

    @pl.when(t == pl.num_programs(1) - 1)
    def _():
        h1p_ref[th + d:th + 2 * d, :, :] = jnp.zeros((d, wc, width),
                                                     h1p_ref.dtype)

    # ---- grouped dilated 3x3 conv as ONE deep-K matmul (im2col over 9 taps) -
    for ky in range(3):
        for kx in range(3):
            k = ky * 3 + kx
            tap = h1p_ref[ky * d:ky * d + th, kx * d:kx * d + w, :]
            col_ref[:, k * width:(k + 1) * width] = tap.reshape(th * w, width)
    h2 = jnp.dot(col_ref[...], w2_ref[...],
                 preferred_element_type=jnp.float32)
    h2 = jnp.maximum(h2 + b2_ref[...], 0.0)           # (TH*W, width), f32

    # ---- conv3 (1x1) + bn3 + residual add + relu ----------------------------
    y = jnp.dot(h2.astype(w3_ref.dtype), w3_ref[...],
                preferred_element_type=jnp.float32)
    y = y + b3_ref[...] + xid_ref[0].reshape(th * w, cout).astype(jnp.float32)
    o_ref[...] = jnp.maximum(y, 0.0).reshape(1, th, w, cout).astype(o_ref.dtype)


# ----------------------------- wrapper ----------------------------------------


def _fold_bn(w_t, gamma, beta, mean, var, eps):
    """Fold inference-mode BN into a weight whose LAST axis is out-channels."""
    scale = gamma / jnp.sqrt(var + eps)
    w_f = (w_t * scale).astype(jnp.float32)
    b_f = (beta - mean * scale).reshape(1, -1).astype(jnp.float32)
    return w_f, b_f


def resnext_bottleneck(x, params, *, groups, dilation=1, eps=1e-5,
                       compute_dtype=jnp.bfloat16, row_tile=None):
    """ResNeXtBottleneck forward (stride=1, downsample=None). x: (B,Cin,H,W)."""
    # TODO(synk): stride != 1 and the optional `downsample` branch (both off by
    # default in the reference module) are not implemented.
    B, Cin, H, W = x.shape
    w1 = params["conv1_w"]            # (width, Cin, 1, 1)
    w2 = params["conv2_w"]            # (width, width//groups, 3, 3)
    w3 = params["conv3_w"]            # (Cout, width, 1, 1)
    width = w1.shape[0]
    Cout = w3.shape[0]
    d = dilation
    assert Cin == Cout and width % groups == 0

    # Row tile: pick a divisor of H; for real feature maps size it so the
    # per-step blocks (identity + output + scratches, double-buffered) fit the
    # generation's VMEM budget (<= ~48 MiB on v7x, more on v5e/v6e).
    TH = H if row_tile is None else row_tile
    assert H % TH == 0
    nT = H // TH

    # --- fold BN, expand grouped weight to block-diagonal, pre-transpose ------
    w1_f, b1_f = _fold_bn(w1[:, :, 0, 0].T, params["bn1_g"], params["bn1_b"],
                          params["bn1_m"], params["bn1_v"], eps)   # (Cin, width)

    cpg = width // groups
    w2_full = jnp.zeros((width, width, 3, 3), jnp.float32)
    for g in range(groups):
        sl = slice(g * cpg, (g + 1) * cpg)
        w2_full = w2_full.at[sl, sl].set(w2[sl])
    # (tap, in, out) with tap = ky*3 + kx, then K-concatenate the taps.
    w2_taps = jnp.transpose(w2_full, (2, 3, 1, 0)).reshape(9, width, width)
    w2_f, b2_f = _fold_bn(w2_taps, params["bn2_g"], params["bn2_b"],
                          params["bn2_m"], params["bn2_v"], eps)
    w2_cat = w2_f.reshape(9 * width, width)                        # (9*width, width)

    w3_f, b3_f = _fold_bn(w3[:, :, 0, 0].T, params["bn3_g"], params["bn3_b"],
                          params["bn3_m"], params["bn3_v"], eps)   # (width, Cout)

    w1_c = w1_f.astype(compute_dtype)
    w2_c = w2_cat.astype(compute_dtype)
    w3_c = w3_f.astype(compute_dtype)

    # --- NCHW -> NHWC so channels sit on the lane (last) dim ------------------
    x_nhwc = jnp.transpose(x, (0, 2, 3, 1))                        # (B, H, W, Cin)
    # H-padded conv input (row halo source) in the MXU compute dtype; the
    # identity path stays f32 for an exact residual add.
    xp = jnp.pad(x_nhwc, ((0, 0), (d, d), (0, 0), (0, 0))).astype(compute_dtype)

    # W axis of the conv2 scratch padded up to a sublane multiple of 8.
    Wc = -(-(W + 2 * d) // 8) * 8

    kernel = functools.partial(_fused_bottleneck_kernel,
                               dilation=d, th=TH, h=H, w=W)

    out_nhwc = pl.pallas_call(
        kernel,
        out_shape=jax.ShapeDtypeStruct((B, H, W, Cout), x.dtype),
        grid_spec=pltpu.PrefetchScalarGridSpec(
            num_scalar_prefetch=0,
            grid=(B, nT),
            in_specs=[
                pl.BlockSpec((1, H + 2 * d, W, Cin), lambda b, t: (b, 0, 0, 0)),
                pl.BlockSpec((1, TH, W, Cout), lambda b, t: (b, t, 0, 0)),
                pl.BlockSpec((Cin, width), lambda b, t: (0, 0)),
                pl.BlockSpec((1, width), lambda b, t: (0, 0)),
                pl.BlockSpec((9 * width, width), lambda b, t: (0, 0)),
                pl.BlockSpec((1, width), lambda b, t: (0, 0)),
                pl.BlockSpec((width, Cout), lambda b, t: (0, 0)),
                pl.BlockSpec((1, Cout), lambda b, t: (0, 0)),
            ],
            out_specs=pl.BlockSpec((1, TH, W, Cout), lambda b, t: (b, t, 0, 0)),
            scratch_shapes=[
                pltpu.VMEM((TH + 2 * d, Wc, width), compute_dtype),
                pltpu.VMEM((TH * W, 9 * width), compute_dtype),
            ],
        ),
        compiler_params=pltpu.CompilerParams(
            dimension_semantics=("parallel", "parallel"),
            vmem_limit_bytes=48 * 1024 * 1024),
    )(xp, x_nhwc, w1_c, b1_f, w2_c, b2_f, w3_c, b3_f)

    return jnp.transpose(out_nhwc, (0, 3, 1, 2))                   # back to NCHW


# ----------------------------- reference --------------------------------------


def resnext_bottleneck_ref(x, params, *, groups, dilation=1, eps=1e-5):
    """Pure-JAX/XLA reference mirroring the PyTorch module (eval-mode BN)."""
    def bn(h, g, b, m, v):
        s = (1, -1, 1, 1)
        return ((h - m.reshape(s)) / jnp.sqrt(v.reshape(s) + eps)
                * g.reshape(s) + b.reshape(s))

    dn = ("NCHW", "OIHW", "NCHW")
    prec = lax.Precision.HIGHEST
    d = dilation

    h = lax.conv_general_dilated(x, params["conv1_w"], (1, 1), "VALID",
                                 dimension_numbers=dn, precision=prec)
    h = jax.nn.relu(bn(h, params["bn1_g"], params["bn1_b"],
                       params["bn1_m"], params["bn1_v"]))
    h = lax.conv_general_dilated(h, params["conv2_w"], (1, 1),
                                 ((d, d), (d, d)), rhs_dilation=(d, d),
                                 dimension_numbers=dn,
                                 feature_group_count=groups, precision=prec)
    h = jax.nn.relu(bn(h, params["bn2_g"], params["bn2_b"],
                       params["bn2_m"], params["bn2_v"]))
    h = lax.conv_general_dilated(h, params["conv3_w"], (1, 1), "VALID",
                                 dimension_numbers=dn, precision=prec)
    h = bn(h, params["bn3_g"], params["bn3_b"],
           params["bn3_m"], params["bn3_v"])
    return jax.nn.relu(h + x)


# ----------------------------- demo / test ------------------------------------


if __name__ == "__main__":
    # Module config (defaults: stride=1, downsample=None, dilation=1).
    inplanes, planes, groups, base_width, dilation = 128, 32, 4, 4, 1
    expansion = 4
    width = int(planes * (base_width / 64.0)) * groups      # = 8
    Cout = planes * expansion                                # = 128 == inplanes

    B, H, W = 2, 8, 8

    key = jax.random.PRNGKey(0)
    keys = jax.random.split(key, 8)

    x = jax.random.normal(keys[0], (B, inplanes, H, W), dtype=jnp.float32)

    def conv_init(k, shape):
        fan_in = shape[1] * shape[2] * shape[3]
        bound = 1.0 / (fan_in ** 0.5)
        return jax.random.uniform(k, shape, jnp.float32, -bound, bound)

    def bn_init(k, c):
        k1, k2, k3, k4 = jax.random.split(k, 4)
        return (jax.random.uniform(k1, (c,), jnp.float32, 0.5, 1.5),   # gamma
                0.1 * jax.random.normal(k2, (c,), jnp.float32),        # beta
                0.1 * jax.random.normal(k3, (c,), jnp.float32),        # running mean
                jax.random.uniform(k4, (c,), jnp.float32, 0.5, 1.5))   # running var

    g1, be1, m1, v1 = bn_init(keys[4], width)
    g2, be2, m2, v2 = bn_init(keys[5], width)
    g3, be3, m3, v3 = bn_init(keys[6], Cout)

    params = {
        "conv1_w": conv_init(keys[1], (width, inplanes, 1, 1)),
        "conv2_w": conv_init(keys[2], (width, width // groups, 3, 3)),
        "conv3_w": conv_init(keys[3], (Cout, width, 1, 1)),
        "bn1_g": g1, "bn1_b": be1, "bn1_m": m1, "bn1_v": v1,
        "bn2_g": g2, "bn2_b": be2, "bn2_m": m2, "bn2_v": v2,
        "bn3_g": g3, "bn3_b": be3, "bn3_m": m3, "bn3_v": v3,
    }

    ref = resnext_bottleneck_ref(x, params, groups=groups, dilation=dilation)

    # Exact-math path (f32 MXU inputs) -- verifies kernel structure tightly.
    out_f32 = resnext_bottleneck(x, params, groups=groups, dilation=dilation,
                                 compute_dtype=jnp.float32, row_tile=4)
    out_f32 = jax.block_until_ready(out_f32)
    assert out_f32.shape == (B, Cout, H, W)
    assert jnp.allclose(out_f32, ref, atol=1e-3, rtol=1e-3), \
        float(jnp.max(jnp.abs(out_f32 - ref)))

    # Fast path (default): bf16 MXU inputs, f32 accumulation.
    out_bf16 = resnext_bottleneck(x, params, groups=groups, dilation=dilation,
                                  row_tile=4)
    out_bf16 = jax.block_until_ready(out_bf16)
    assert out_bf16.shape == (B, Cout, H, W)
    assert jnp.allclose(out_bf16, ref, atol=5e-2, rtol=5e-2), \
        float(jnp.max(jnp.abs(out_bf16 - ref)))

    print("KERNEL_OK")
</pallas_src>

<mosaic_0001>
module attributes {stable_mosaic.version = 11 : i64} {
  func.func @_fused_bottleneck_kernel(%arg0: i32, %arg1: i32, %arg2: memref<1x10x8x128xf32, #tpu.memory_space<vmem>>, %arg3: memref<1x4x8x128xf32, #tpu.memory_space<vmem>>, %arg4: memref<128x8xf32, #tpu.memory_space<vmem>>, %arg5: memref<1x8xf32, #tpu.memory_space<vmem>>, %arg6: memref<72x8xf32, #tpu.memory_space<vmem>>, %arg7: memref<1x8xf32, #tpu.memory_space<vmem>>, %arg8: memref<8x128xf32, #tpu.memory_space<vmem>>, %arg9: memref<1x128xf32, #tpu.memory_space<vmem>>, %arg10: memref<1x4x8x128xf32, #tpu.memory_space<vmem>>, %arg11: memref<6x16x8xf32, #tpu.memory_space<vmem>>, %arg12: memref<32x72xf32, #tpu.memory_space<vmem>>) attributes {dimension_semantics = [#tpu.dimension_semantics<parallel>, #tpu.dimension_semantics<parallel>], iteration_bounds = array<i64: 2, 2>, scalar_prefetch = 0 : i64, scratch_operands = 2 : i64, tpu.core_type = #tpu.core_type<tc>, window_params = [{transform_indices = @transform_0, window_bounds = array<i64: 1, 10, 8, 128>}, {transform_indices = @transform_1, window_bounds = array<i64: 1, 4, 8, 128>}, {pipeline_mode = #tpu.pipeline_mode<synchronous>, transform_indices = @transform_2, window_bounds = array<i64: 128, 8>}, {pipeline_mode = #tpu.pipeline_mode<synchronous>, transform_indices = @transform_3, window_bounds = array<i64: 1, 8>}, {pipeline_mode = #tpu.pipeline_mode<synchronous>, transform_indices = @transform_4, window_bounds = array<i64: 72, 8>}, {pipeline_mode = #tpu.pipeline_mode<synchronous>, transform_indices = @transform_5, window_bounds = array<i64: 1, 8>}, {pipeline_mode = #tpu.pipeline_mode<synchronous>, transform_indices = @transform_6, window_bounds = array<i64: 8, 128>}, {pipeline_mode = #tpu.pipeline_mode<synchronous>, transform_indices = @transform_7, window_bounds = array<i64: 1, 128>}, {transform_indices = @transform_8, window_bounds = array<i64: 1, 4, 8, 128>}]} {
    %c4_i32 = arith.constant 4 : i32
    %0 = arith.muli %arg1, %c4_i32 : i32
    %1 = tpu.assume_multiple %0, 4 : i32
    %c0 = arith.constant 0 : index
    %2 = arith.index_cast %1 : i32 to index
    %c0_0 = arith.constant 0 : index
    %c0_1 = arith.constant 0 : index
    %3 = vector.load %arg2[%c0, %2, %c0_0, %c0_1] : memref<1x10x8x128xf32, #tpu.memory_space<vmem>>, vector<1x6x8x128xf32>
    %4 = vector.shape_cast %3 : vector<1x6x8x128xf32> to vector<6x8x128xf32>
    %5 = vector.shape_cast %4 : vector<6x8x128xf32> to vector<48x128xf32>
    %c0_2 = arith.constant 0 : index
    %c0_3 = arith.constant 0 : index
    %6 = vector.load %arg4[%c0_2, %c0_3] : memref<128x8xf32, #tpu.memory_space<vmem>>, vector<128x8xf32>
    %cst = arith.constant dense<0.000000e+00> : vector<48x8xf32>
    %7 = tpu.matmul %5, %6, %cst {dimension_numbers = #tpu.dot_dimension_numbers<[1], [0], [0], [1], [0, 0, 1, 1], [], []>} : vector<48x128xf32>, vector<128x8xf32>, vector<48x8xf32> -> vector<48x8xf32>
    %c0_4 = arith.constant 0 : index
    %c0_5 = arith.constant 0 : index
    %8 = vector.load %arg5[%c0_4, %c0_5] : memref<1x8xf32, #tpu.memory_space<vmem>>, vector<1x8xf32>
    %9 = vector.broadcast %8 : vector<1x8xf32> to vector<48x8xf32>
    %10 = arith.addf %7, %9 : vector<48x8xf32>
    %cst_6 = arith.constant 0.000000e+00 : f32
    %11 = vector.broadcast %cst_6 : f32 to vector<48x8xf32>
    %12 = arith.maximumf %10, %11 : vector<48x8xf32>
    %13 = vector.shape_cast %12 : vector<48x8xf32> to vector<6x8x8xf32>
    %cst_7 = arith.constant 0.000000e+00 : f32
    %14 = vector.broadcast %cst_7 : f32 to vector<6x1x8xf32>
    %c0_8 = arith.constant 0 : index
    %c0_9 = arith.constant 0 : index
    %c0_10 = arith.constant 0 : index
    %15 = vector.load %arg11[%c0_8, %c0_9, %c0_10] : memref<6x16x8xf32, #tpu.memory_space<vmem>>, vector<6x1x8xf32>
    tpu.vector_store %arg11[%c0_8, %c0_9, %c0_10], %14 {strides = array<i32>} : memref<6x16x8xf32, #tpu.memory_space<vmem>>, vector<6x1x8xf32>,
    %cst_11 = arith.constant 0.000000e+00 : f32
    %16 = vector.broadcast %cst_11 : f32 to vector<6x7x8xf32>
    %c0_12 = arith.constant 0 : index
    %c9 = arith.constant 9 : index
    %c0_13 = arith.constant 0 : index
    %17 = vector.load %arg11[%c0_12, %c9, %c0_13] : memref<6x16x8xf32, #tpu.memory_space<vmem>>, vector<6x7x8xf32>
    tpu.vector_store %arg11[%c0_12, %c9, %c0_13], %16 {strides = array<i32>} : memref<6x16x8xf32, #tpu.memory_space<vmem>>, vector<6x7x8xf32>,
    %c0_14 = arith.constant 0 : index
    %c1 = arith.constant 1 : index
    %c0_15 = arith.constant 0 : index
    %18 = vector.load %arg11[%c0_14, %c1, %c0_15] : memref<6x16x8xf32, #tpu.memory_space<vmem>>, vector<6x8x8xf32>
    tpu.vector_store %arg11[%c0_14, %c1, %c0_15], %13 {strides = array<i32>} : memref<6x16x8xf32, #tpu.memory_space<vmem>>, vector<6x8x8xf32>,
    %c0_i32 = arith.constant 0 : i32
    %19 = arith.cmpi eq, %arg1, %c0_i32 : i32
    %20 = arith.extui %19 : i1 to i32
    %c0_i32_16 = arith.constant 0 : i32
    %21 = arith.cmpi ne, %20, %c0_i32_16 : i32
    scf.if %21 {
      %cst_76 = arith.constant 0.000000e+00 : f32
      %73 = vector.broadcast %cst_76 : f32 to vector<1x16x8xf32>
      %c0_77 = arith.constant 0 : index
      %c0_78 = arith.constant 0 : index
      %c0_79 = arith.constant 0 : index
      %74 = vector.load %arg11[%c0_77, %c0_78, %c0_79] : memref<6x16x8xf32, #tpu.memory_space<vmem>>, vector<1x16x8xf32>
      tpu.vector_store %arg11[%c0_77, %c0_78, %c0_79], %73 {strides = array<i32>} : memref<6x16x8xf32, #tpu.memory_space<vmem>>, vector<1x16x8xf32>,
    } else {
    }
    %c1_i32 = arith.constant 1 : i32
    %22 = arith.cmpi eq, %arg1, %c1_i32 : i32
    %23 = arith.extui %22 : i1 to i32
    %c0_i32_17 = arith.constant 0 : i32
    %24 = arith.cmpi ne, %23, %c0_i32_17 : i32
    scf.if %24 {
      %cst_76 = arith.constant 0.000000e+00 : f32
      %73 = vector.broadcast %cst_76 : f32 to vector<1x16x8xf32>
      %c5 = arith.constant 5 : index
      %c0_77 = arith.constant 0 : index
      %c0_78 = arith.constant 0 : index
      %74 = vector.load %arg11[%c5, %c0_77, %c0_78] : memref<6x16x8xf32, #tpu.memory_space<vmem>>, vector<1x16x8xf32>
      tpu.vector_store %arg11[%c5, %c0_77, %c0_78], %73 {strides = array<i32>} : memref<6x16x8xf32, #tpu.memory_space<vmem>>, vector<1x16x8xf32>,
    } else {
    }
    %c0_18 = arith.constant 0 : index
    %c0_19 = arith.constant 0 : index
    %c0_20 = arith.constant 0 : index
    %25 = vector.load %arg11[%c0_18, %c0_19, %c0_20] : memref<6x16x8xf32, #tpu.memory_space<vmem>>, vector<4x8x8xf32>
    %26 = vector.shape_cast %25 : vector<4x8x8xf32> to vector<32x8xf32>
    %c0_21 = arith.constant 0 : index
    %c0_22 = arith.constant 0 : index
    %27 = vector.load %arg12[%c0_21, %c0_22] : memref<32x72xf32, #tpu.memory_space<vmem>>, vector<32x8xf32>
    tpu.vector_store %arg12[%c0_21, %c0_22], %26 {strides = array<i32>} : memref<32x72xf32, #tpu.memory_space<vmem>>, vector<32x8xf32>,
    %c0_23 = arith.constant 0 : index
    %c1_24 = arith.constant 1 : index
    %c0_25 = arith.constant 0 : index
    %28 = vector.load %arg11[%c0_23, %c1_24, %c0_25] : memref<6x16x8xf32, #tpu.memory_space<vmem>>, vector<4x8x8xf32>
    %29 = vector.shape_cast %28 : vector<4x8x8xf32> to vector<32x8xf32>
    %c0_26 = arith.constant 0 : index
    %c8 = arith.constant 8 : index
    %30 = vector.load %arg12[%c0_26, %c8] : memref<32x72xf32, #tpu.memory_space<vmem>>, vector<32x8xf32>
    tpu.vector_store %arg12[%c0_26, %c8], %29 {strides = array<i32>} : memref<32x72xf32, #tpu.memory_space<vmem>>, vector<32x8xf32>,
    %c0_27 = arith.constant 0 : index
    %c2 = arith.constant 2 : index
    %c0_28 = arith.constant 0 : index
    %31 = vector.load %arg11[%c0_27, %c2, %c0_28] : memref<6x16x8xf32, #tpu.memory_space<vmem>>, vector<4x8x8xf32>
    %32 = vector.shape_cast %31 : vector<4x8x8xf32> to vector<32x8xf32>
    %c0_29 = arith.constant 0 : index
    %c16 = arith.constant 16 : index
    %33 = vector.load %arg12[%c0_29, %c16] : memref<32x72xf32, #tpu.memory_space<vmem>>, vector<32x8xf32>
    tpu.vector_store %arg12[%c0_29, %c16], %32 {strides = array<i32>} : memref<32x72xf32, #tpu.memory_space<vmem>>, vector<32x8xf32>,
    %c1_30 = arith.constant 1 : index
    %c0_31 = arith.constant 0 : index
    %c0_32 = arith.constant 0 : index
    %34 = vector.load %arg11[%c1_30, %c0_31, %c0_32] : memref<6x16x8xf32, #tpu.memory_space<vmem>>, vector<4x8x8xf32>
    %35 = vector.shape_cast %34 : vector<4x8x8xf32> to vector<32x8xf32>
    %c0_33 = arith.constant 0 : index
    %c24 = arith.constant 24 : index
    %36 = vector.load %arg12[%c0_33, %c24] : memref<32x72xf32, #tpu.memory_space<vmem>>, vector<32x8xf32>
    tpu.vector_store %arg12[%c0_33, %c24], %35 {strides = array<i32>} : memref<32x72xf32, #tpu.memory_space<vmem>>, vector<32x8xf32>,
    %c1_34 = arith.constant 1 : index
    %c1_35 = arith.constant 1 : index
    %c0_36 = arith.constant 0 : index
    %37 = vector.load %arg11[%c1_34, %c1_35, %c0_36] : memref<6x16x8xf32, #tpu.memory_space<vmem>>, vector<4x8x8xf32>
    %38 = vector.shape_cast %37 : vector<4x8x8xf32> to vector<32x8xf32>
    %c0_37 = arith.constant 0 : index
    %c32 = arith.constant 32 : index
    %39 = vector.load %arg12[%c0_37, %c32] : memref<32x72xf32, #tpu.memory_space<vmem>>, vector<32x8xf32>
    tpu.vector_store %arg12[%c0_37, %c32], %38 {strides = array<i32>} : memref<32x72xf32, #tpu.memory_space<vmem>>, vector<32x8xf32>,
    %c1_38 = arith.constant 1 : index
    %c2_39 = arith.constant 2 : index
    %c0_40 = arith.constant 0 : index
    %40 = vector.load %arg11[%c1_38, %c2_39, %c0_40] : memref<6x16x8xf32, #tpu.memory_space<vmem>>, vector<4x8x8xf32>
    %41 = vector.shape_cast %40 : vector<4x8x8xf32> to vector<32x8xf32>
    %c0_41 = arith.constant 0 : index
    %c40 = arith.constant 40 : index
    %42 = vector.load %arg12[%c0_41, %c40] : memref<32x72xf32, #tpu.memory_space<vmem>>, vector<32x8xf32>
    tpu.vector_store %arg12[%c0_41, %c40], %41 {strides = array<i32>} : memref<32x72xf32, #tpu.memory_space<vmem>>, vector<32x8xf32>,
    %c2_42 = arith.constant 2 : index
    %c0_43 = arith.constant 0 : index
    %c0_44 = arith.constant 0 : index
    %43 = vector.load %arg11[%c2_42, %c0_43, %c0_44] : memref<6x16x8xf32, #tpu.memory_space<vmem>>, vector<4x8x8xf32>
    %44 = vector.shape_cast %43 : vector<4x8x8xf32> to vector<32x8xf32>
    %c0_45 = arith.constant 0 : index
    %c48 = arith.constant 48 : index
    %45 = vector.load %arg12[%c0_45, %c48] : memref<32x72xf32, #tpu.memory_space<vmem>>, vector<32x8xf32>
    tpu.vector_store %arg12[%c0_45, %c48], %44 {strides = array<i32>} : memref<32x72xf32, #tpu.memory_space<vmem>>, vector<32x8xf32>,
    %c2_46 = arith.constant 2 : index
    %c1_47 = arith.constant 1 : index
    %c0_48 = arith.constant 0 : index
    %46 = vector.load %arg11[%c2_46, %c1_47, %c0_48] : memref<6x16x8xf32, #tpu.memory_space<vmem>>, vector<4x8x8xf32>
    %47 = vector.shape_cast %46 : vector<4x8x8xf32> to vector<32x8xf32>
    %c0_49 = arith.constant 0 : index
    %c56 = arith.constant 56 : index
    %48 = vector.load %arg12[%c0_49, %c56] : memref<32x72xf32, #tpu.memory_space<vmem>>, vector<32x8xf32>
    tpu.vector_store %arg12[%c0_49, %c56], %47 {strides = array<i32>} : memref<32x72xf32, #tpu.memory_space<vmem>>, vector<32x8xf32>,
    %c2_50 = arith.constant 2 : index
    %c2_51 = arith.constant 2 : index
    %c0_52 = arith.constant 0 : index
    %49 = vector.load %arg11[%c2_50, %c2_51, %c0_52] : memref<6x16x8xf32, #tpu.memory_space<vmem>>, vector<4x8x8xf32>
    %50 = vector.shape_cast %49 : vector<4x8x8xf32> to vector<32x8xf32>
    %c0_53 = arith.constant 0 : index
    %c64 = arith.constant 64 : index
    %51 = vector.load %arg12[%c0_53, %c64] : memref<32x72xf32, #tpu.memory_space<vmem>>, vector<32x8xf32>
    tpu.vector_store %arg12[%c0_53, %c64], %50 {strides = array<i32>} : memref<32x72xf32, #tpu.memory_space<vmem>>, vector<32x8xf32>,
    %c0_54 = arith.constant 0 : index
    %c0_55 = arith.constant 0 : index
    %52 = vector.load %arg12[%c0_54, %c0_55] : memref<32x72xf32, #tpu.memory_space<vmem>>, vector<32x72xf32>
    %c0_56 = arith.constant 0 : index
    %c0_57 = arith.constant 0 : index
    %53 = vector.load %arg6[%c0_56, %c0_57] : memref<72x8xf32, #tpu.memory_space<vmem>>, vector<72x8xf32>
    %cst_58 = arith.constant dense<0.000000e+00> : vector<32x8xf32>
    %54 = tpu.matmul %52, %53, %cst_58 {dimension_numbers = #tpu.dot_dimension_numbers<[1], [0], [0], [1], [0, 0, 1, 1], [], []>} : vector<32x72xf32>, vector<72x8xf32>, vector<32x8xf32> -> vector<32x8xf32>
    %c0_59 = arith.constant 0 : index
    %c0_60 = arith.constant 0 : index
    %55 = vector.load %arg7[%c0_59, %c0_60] : memref<1x8xf32, #tpu.memory_space<vmem>>, vector<1x8xf32>
    %56 = vector.broadcast %55 : vector<1x8xf32> to vector<32x8xf32>
    %57 = arith.addf %54, %56 : vector<32x8xf32>
    %cst_61 = arith.constant 0.000000e+00 : f32
    %58 = vector.broadcast %cst_61 : f32 to vector<32x8xf32>
    %59 = arith.maximumf %57, %58 : vector<32x8xf32>
    %c0_62 = arith.constant 0 : index
    %c0_63 = arith.constant 0 : index
    %60 = vector.load %arg8[%c0_62, %c0_63] : memref<8x128xf32, #tpu.memory_space<vmem>>, vector<8x128xf32>
    %cst_64 = arith.constant dense<0.000000e+00> : vector<32x128xf32>
    %61 = tpu.matmul %59, %60, %cst_64 {dimension_numbers = #tpu.dot_dimension_numbers<[1], [0], [0], [1], [0, 0, 1, 1], [], []>} : vector<32x8xf32>, vector<8x128xf32>, vector<32x128xf32> -> vector<32x128xf32>
    %c0_65 = arith.constant 0 : index
    %c0_66 = arith.constant 0 : index
    %62 = vector.load %arg9[%c0_65, %c0_66] : memref<1x128xf32, #tpu.memory_space<vmem>>, vector<1x128xf32>
    %63 = vector.broadcast %62 : vector<1x128xf32> to vector<32x128xf32>
    %64 = arith.addf %61, %63 : vector<32x128xf32>
    %c0_67 = arith.constant 0 : index
    %c0_68 = arith.constant 0 : index
    %c0_69 = arith.constant 0 : index
    %c0_70 = arith.constant 0 : index
    %65 = vector.load %arg3[%c0_67, %c0_68, %c0_69, %c0_70] : memref<1x4x8x128xf32, #tpu.memory_space<vmem>>, vector<1x4x8x128xf32>
    %66 = vector.shape_cast %65 : vector<1x4x8x128xf32> to vector<4x8x128xf32>
    %67 = vector.shape_cast %66 : vector<4x8x128xf32> to vector<32x128xf32>
    %68 = arith.addf %64, %67 : vector<32x128xf32>
    %cst_71 = arith.constant 0.000000e+00 : f32
    %69 = vector.broadcast %cst_71 : f32 to vector<32x128xf32>
    %70 = arith.maximumf %68, %69 : vector<32x128xf32>
    %71 = vector.shape_cast %70 : vector<32x128xf32> to vector<1x4x8x128xf32>
    %c0_72 = arith.constant 0 : index
    %c0_73 = arith.constant 0 : index
    %c0_74 = arith.constant 0 : index
    %c0_75 = arith.constant 0 : index
    %72 = vector.load %arg10[%c0_72, %c0_73, %c0_74, %c0_75] : memref<1x4x8x128xf32, #tpu.memory_space<vmem>>, vector<1x4x8x128xf32>
    tpu.vector_store %arg10[%c0_72, %c0_73, %c0_74, %c0_75], %71 {strides = array<i32>} : memref<1x4x8x128xf32, #tpu.memory_space<vmem>>, vector<1x4x8x128xf32>,
    return
  }
  func.func @transform_0(%arg0: i32, %arg1: i32) -> (i32, i32, i32, i32) {
    %c0_i32 = arith.constant 0 : i32
    %c0_i32_0 = arith.constant 0 : i32
    %c0_i32_1 = arith.constant 0 : i32
    %c0_i32_2 = arith.constant 0 : i32
    return %arg0, %c0_i32, %c0_i32_0, %c0_i32_1 : i32, i32, i32, i32
  }
  func.func @transform_1(%arg0: i32, %arg1: i32) -> (i32, i32, i32, i32) {
    %c0_i32 = arith.constant 0 : i32
    %c0_i32_0 = arith.constant 0 : i32
    %c0_i32_1 = arith.constant 0 : i32
    return %arg0, %arg1, %c0_i32, %c0_i32_0 : i32, i32, i32, i32
  }
  func.func @transform_2(%arg0: i32, %arg1: i32) -> (i32, i32) {
    %c0_i32 = arith.constant 0 : i32
    %c0_i32_0 = arith.constant 0 : i32
    %c0_i32_1 = arith.constant 0 : i32
    return %c0_i32, %c0_i32_0 : i32, i32
  }
  func.func @transform_3(%arg0: i32, %arg1: i32) -> (i32, i32) {
    %c0_i32 = arith.constant 0 : i32
    %c0_i32_0 = arith.constant 0 : i32
    %c0_i32_1 = arith.constant 0 : i32
    return %c0_i32, %c0_i32_0 : i32, i32
  }
  func.func @transform_4(%arg0: i32, %arg1: i32) -> (i32, i32) {
    %c0_i32 = arith.constant 0 : i32
    %c0_i32_0 = arith.constant 0 : i32
    %c0_i32_1 = arith.constant 0 : i32
    return %c0_i32, %c0_i32_0 : i32, i32
  }
  func.func @transform_5(%arg0: i32, %arg1: i32) -> (i32, i32) {
    %c0_i32 = arith.constant 0 : i32
    %c0_i32_0 = arith.constant 0 : i32
    %c0_i32_1 = arith.constant 0 : i32
    return %c0_i32, %c0_i32_0 : i32, i32
  }
  func.func @transform_6(%arg0: i32, %arg1: i32) -> (i32, i32) {
    %c0_i32 = arith.constant 0 : i32
    %c0_i32_0 = arith.constant 0 : i32
    %c0_i32_1 = arith.constant 0 : i32
    return %c0_i32, %c0_i32_0 : i32, i32
  }
  func.func @transform_7(%arg0: i32, %arg1: i32) -> (i32, i32) {
    %c0_i32 = arith.constant 0 : i32
    %c0_i32_0 = arith.constant 0 : i32
    %c0_i32_1 = arith.constant 0 : i32
    return %c0_i32, %c0_i32_0 : i32, i32
  }
  func.func @transform_8(%arg0: i32, %arg1: i32) -> (i32, i32, i32, i32) {
    %c0_i32 = arith.constant 0 : i32
    %c0_i32_0 = arith.constant 0 : i32
    %c0_i32_1 = arith.constant 0 : i32
    return %arg0, %arg1, %c0_i32, %c0_i32_0 : i32, i32, i32, i32
  }
}

</mosaic_0001>

<bundles_post_ra>
// kernel: tpu_custom_call.1
= control target key start
LH: loop header
LB: loop body
LE: loop exit
PB: predicated region body
PF: predicated region fallthrough
CT: control target
= control target key end

     0   :  { %s1979_s0 = inlined_call_operand.vmem [shape: f32[2,10,8,128], index: 0, kind: input, shape index: {}]   ;;  %s1980_s1 = inlined_call_operand.hbm [shape: f32[2,8,8,128], index: 1, kind: input, shape index: {}]   ;;  %s1981_s2 = inlined_call_operand.vmem [shape: f32[128,8], index: 2, kind: input, shape index: {}]   ;;  %s1982_s3 = inlined_call_operand.vmem [shape: f32[1,8], index: 3, kind: input, shape index: {}]   ;;  %s1983_s4 = inlined_call_operand.vmem [shape: f32[72,8], index: 4, kind: input, shape index: {}]   ;;  %s1984_s5 = inlined_call_operand.vmem [shape: f32[1,8], index: 5, kind: input, shape index: {}]   ;;  %s1985_s6 = inlined_call_operand.vmem [shape: f32[8,128], index: 6, kind: input, shape index: {}]   ;;  %s1986_s7 = inlined_call_operand.vmem [shape: f32[1,128], index: 7, kind: input, shape index: {}]   ;;  %s1987_s8 = inlined_call_operand.hbm [shape: f32[2,8,8,128], index: 8, kind: output, shape index: {}]  }
   0x1   :  { %1997 = sst [smem:[#allocation13_spill]] %s1984_s5 }
   0x2   :  { %1998 = sst [smem:[#allocation14_spill]] %s1986_s7 }
   0x3   :  { %1999 = sst [smem:[#allocation15_spill]] %s1987_s8 }
   0x4   :  { %13 = vsyncpa [#allocation5], 0 }
   0x5   :  { %15 = vsyncpa [#allocation5 + $0x1], 0 }
   0x6   :  { %16 = vsyncpa [#allocation6], 0 }
   0x7   :  { %18 = vsyncpa [#allocation6 + $0x1], 0  ;;  %s1583_s27 = smov 0   ;;  %s1585_s28 = smov 0  }
   0x8   :  { %s1587_s29 = smov 0   ;;  %s1589_s30 = smov 0  }
   0x9   :  { %s1591_s9 = smov 0   ;;  %s1593_s10 = smov 0  }
   0xa   :  { %s1595_s11 = smov 0   ;;  %s1597_s12 = smov 0  }
   0xb LB: > { %2000 = sst [smem:[#allocation10_spill]] %s1492_s27  ;;  %s1104_s13 = sadd.s32 4294967295, %s1520_s12   ;;  %s1520_s12 = sphi %s1597_s12, %s24_s12   ;;  %s1516_s11 = sphi %s1595_s11, %s2026_s11   ;;  %s1512_s10 = sphi %s1593_s10, %s2025_s10   ;;  %s1508_s9 = sphi %s1591_s9, %s2024_s9   ;;  %s1504_s30 = sphi %s1589_s30, %s2023_s30   ;;  %s1500_s29 = sphi %s1587_s29, %s2022_s29   ;;  %s1496_s28 = sphi %s1585_s28, %s2021_s28   ;;  %s1492_s27 = sphi %s1583_s27, %s2020_s27  }
   0xc   : > { %s1105_s14 = sadd.s32 4294967294, %s1520_s12   ;;  %s33_s15 = sadd.s32 1, %s1512_s10 }
   0xd   : > { %s36_s16 = sadd.s32 1, %s1516_s11  ;;  %p34_p0 = scmp.ge.s32.totalorder %s33_s15, 2 }
   0xe   : > { %s71_s17 = sadd.s32 1, %s1500_s29  ;;  %p78_p1 = scmp.ne.s32.totalorder %s1500_s29, %s1496_s28 }
   0xf   : > { %p79_p2 = scmp.eq.s32.totalorder %s1520_s12, 0  ;;  %s2028_s15 = smov (%p34_p0, %s33_s15), 0 }
  0x10   : > { %2001 = sst [smem:[#allocation11_spill]] %s2028_s15  ;;  %s2030_s16 = smov (!%p34_p0, %s36_s16), %s1516_s11 }
  0x11   : > { %s67_s18 = ssub.s32 %s1512_s10, %s2028_s15  ;;  %p1636_p3 = por %p79_p2, %p78_p1 }
  0x12   : > { %p38_p4 = scmp.ge.s32.totalorder %s2030_s16, 2  ;;  %p84_p5 = scmp.ne.s32.totalorder %s1496_s28, %s1492_s27 }
  0x13   : > { %p85_p6 = scmp.eq.s32.totalorder %s1104_s13, 0  ;;  %p236_p7 = scmp.eq.s32.totalorder %s1104_s13, 3 }
  0x14   : > { %s2032_s16 = smov (%p38_p4, %s2030_s16), 0  ;;  %p242_p10 = scmp.eq.s32.totalorder %s1105_s14, 3 }
  0x15   : > { %2003 = sst [smem:[#allocation12_spill]] %s2032_s16  ;;  %p1644_p8 = por %p85_p6, %p84_p5 }
  0x16   : > { %p1648_p9 = por %p236_p7, %p78_p1  ;;  %s66_s22 = ssub.s32 %s1516_s11, %s2032_s16 }
  0x17   : > { %s68_s23 = sor.u32 %s67_s18, %s66_s22  ;;  %p1654_p12 = por %p242_p10, %p84_p5 }
  0x18   : > { %s2005_s21 = scalar_select %p1648_p9, 1, 0 }
  0x19   : > { %p69_p11 = scmp.eq.s32.totalorder %s68_s23, 0  ;;  %p1312_p13 = scmp.lt.s32.totalorder %s1520_s12, 4 }
  0x1a   : > { %s2006_s24 = scalar_select %p1654_p12, 1, 0 }
  0x1b   : > { %s288_s25 = sand.u32 1, %s1500_s29   ;;  %s1109_s15 = sshll.u32 %s1512_s10, 2 }
  0x1c   : > { %s1661_s26 = scalar_select %p69_p11, %s1500_s29, %s71_s17  }
  0x1d   : > { %s1108_s13 = sshll.u32 %s288_s25, 5  ;;  %s1110_s27 = sshll.u32 %s1516_s11, 3 }
  0x1e   : > { %s292_s8 = scalar_lea.vmem [#allocation4], %s1108_s13  ;;  %s298_s5 = sadd.s32 %s1110_s27, %s1109_s15 }
  0x1f   : > { %s301_s7 = sshll.u32 %s292_s8, 4  ;;  %s1111_s16 = sshll.u32 %s298_s5, 7  ;;  %s1665_s7 = int_to_ptr.vmem [resolvable:$true] %s301_s7 }
  0x20   : > { %p1669_p0 = pnand %p1312_p13, %p1636_p3  ;;  %s1676_s17 = scalar_lea.hbm %s1980_s1, %s1111_s16 }
  0x21   : > { %s1678_s8 = scalar_lea.sflag [#allocation5], %s288_s25  ;;  %s1392_s27 = scalar_lea.hbm %s1676_s17, 512 }
  0x22   : > { %p1393_p1 = scmp.ne.s32.totalorder %s1676_s17, %s1392_s27  ;;  %p1394_p2 = pneg %p1669_p0 }
  0x23   : > { %s1397_s19 = scalar_lea.hbm %s1980_s1, 2048  ;;  %p1398_p5 = scmp.lt.u32.totalorder %s1676_s17, %s1980_s1 }
  0x24   : > { %p1395_p3 = pnand %p1394_p2, %p1393_p1  ;;  %p1399_p6 = scmp.lt.u32.totalorder %s1397_s19, %s1392_s27 }
  0x25   : > { %p1401_p10 = scmp.lt.u32.totalorder %s1392_s27, %s1676_s17 }
  0x26   : > { %p1396_p4 = pneg %p1395_p3  ;;  %p1400_p7 = por %p1399_p6, %p1398_p5 }
  0x28   : > { %p1402_p11 = por %p1401_p10, %p1400_p7 }
  0x2a   : > { %p1403_p13 = pnand %p1402_p11, %p1396_p4 }
  0x2c   : > { %1406 = shalt.err (!%p1403_p13)
}
  0x2d   : > { %s1407_s25 = scalar_lea.vmem %s1665_s7, 512  ;;  %s1522_s13 = smov [#allocation4]  }
  0x2e   : > { %p1408_p1 = scmp.ne.s32.totalorder %s1665_s7, %s1407_s25  ;;  %s1412_s18 = sshll.u32 %s1522_s13, 4  ;;  %s1413_s18 = int_to_ptr.vmem [resolvable:$false] %s1412_s18 }
  0x2f   : > { %s1414_s22 = scalar_lea.vmem %s1413_s18, 1024  ;;  %p1415_p9 = scmp.lt.s32.totalorder %s1665_s7, %s1413_s18 }
  0x30   : > { %p1410_p3 = pnand %p1408_p1, %p1394_p2  ;;  %p1416_p5 = scmp.lt.s32.totalorder %s1414_s22, %s1407_s25 }
  0x32   : > { %p1411_p12 = pneg %p1410_p3  ;;  %p1417_p6 = por %p1416_p5, %p1415_p9 }
  0x34   : > { %p1418_p7 = pnand %p1417_p6, %p1411_p12 }
  0x36   : > { %1421 = shalt.err (!%p1418_p7)
}
  0x37   : > { %s1523_s27 = smov 128   ;;  %s1524_s5 = smov 8  }
  0x38   : > { %1307 = dma.hbm_to_vmem [thread:$0]  (!%p1669_p0), %s1676_s17, 512, %s1665_s7, %s1678_s8, %s1523_s27, %s1523_s27, %s1524_s5  }
  0x39   : > { %p1112_p2 = scmp.ge.s32.totalorder %s1520_s12, 1  ;;  %p309_p4 = scmp.lt.s32.totalorder %s1520_s12, 5 }
  0x3b   : > { %p310_p10 = pnand %p1112_p2, %p309_p4 }
  0x3c   : > { %s1709_s15 = sand.u32 (!%p310_p10), 1, %s1496_s28  }
  0x3d   : > { %313 = sbr.rel (%p310_p10) target bundleno = 977 (0x3d1), region = 52  ;;  %s1993_s19 = sshll.u32 (!%p310_p10), %s1709_s15, 5 }
  0x3e   : > { %s316_s16 = scalar_lea.sflag (!%p310_p10), [#allocation5], %s1709_s15  ;;  %s1715_s23 = scalar_lea.vmem (!%p310_p10), [#allocation4], %s1993_s19 }
  0x44   : > { %1483 = dma.done.wait (%p1644_p8), %s316_s16, 512  }
  0x45   : > { %1485 = vsyncadd (%p1644_p8), %s316_s16, 4294966784  ;;  %vm497_vm0 = vcmask 57344   ;;  %vm504_vm1 = vcmask 63488   ;;  %p357_p9 = scmp.lt.s32.totalorder %s1508_s9, 1  ;;  %v1525_v0 = vmov 0.0   ;;  %s1137_s25 = sshll.u32 %s1504_s30, 5 }
  0x46   : > { %498 = vst.msk [vmem:[#allocation2] sm:$0x1] %vm497_vm0, %v1525_v0  ;;  %499 = vst.msk [vmem:[#allocation2 + $0x10] sm:$0x1] %vm497_vm0, %v1525_v0  ;;  %v373_v1 = vld [vmem:[%s1981_s2] sm:$0xff]  ;;  %v374_v2 = vld [vmem:[%s1981_s2 + $0x8] sm:$0xff] }
  0x47   : > { %500 = vst.msk [vmem:[#allocation2 + $0x20] sm:$0x1] %vm497_vm0, %v1525_v0  ;;  %501 = vst.msk [vmem:[#allocation2 + $0x30] sm:$0x1] %vm497_vm0, %v1525_v0  ;;  %s358_s7 = scalar_select %p357_p9, %s1508_s9, 1  ;;  %v375_v3 = vld [vmem:[%s1981_s2 + $0x10] sm:$0xff]  ;;  %v1251_v4 = vpack.c.bf16 %v374_v2, %v373_v1 }
  0x48   : > { %502 = vst.msk [vmem:[#allocation2 + $0x40] sm:$0x1] %vm497_vm0, %v1525_v0  ;;  %503 = vst.msk [vmem:[#allocation2 + $0x50] sm:$0x1] %vm497_vm0, %v1525_v0  ;;  %v376_v5 = vld [vmem:[%s1981_s2 + $0x18] sm:$0xff]  ;;  %v377_v7 = vld [vmem:[%s1981_s2 + $0x20] sm:$0xff] }
  0x49   : > { %505 = vst.msk [vmem:[#allocation2 + $0x9] sm:$0x7f] %vm504_vm1, %v1525_v0  ;;  %506 = vst.msk [vmem:[#allocation2 + $0x19] sm:$0x7f] %vm504_vm1, %v1525_v0  ;;  %s1299_s20 = smul.u32 80, %s358_s7  ;;  %v1255_v6 = vpack.c.bf16 %v376_v5, %v375_v3  ;;  %v378_v8 = vld [vmem:[%s1981_s2 + $0x28] sm:$0xff]  ;;  %1252 = vmatprep.subr.bf16.mxu0 %v1251_v4 }
  0x4a   : > { %507 = vst.msk [vmem:[#allocation2 + $0x29] sm:$0x7f] %vm504_vm1, %v1525_v0  ;;  %508 = vst.msk [vmem:[#allocation2 + $0x39] sm:$0x7f] %vm504_vm1, %v1525_v0  ;;  %1254 = vmatpush3.bf16.msra.mxu0 %v1251_v4  ;;  %v1259_v9 = vpack.c.bf16 %v378_v8, %v377_v7  ;;  %v379_v11 = vld [vmem:[%s1981_s2 + $0x30] sm:$0xff]  ;;  %v380_v12 = vld [vmem:[%s1981_s2 + $0x38] sm:$0xff] }
  0x4b   : > { %509 = vst.msk [vmem:[#allocation2 + $0x49] sm:$0x7f] %vm504_vm1, %v1525_v0  ;;  %510 = vst.msk [vmem:[#allocation2 + $0x59] sm:$0x7f] %vm504_vm1, %v1525_v0  ;;  %s361_s8 = scalar_lea.vmem %s1979_s0, %s1299_s20  ;;  %1256 = vmatprep.subr.bf16.mxu0 %v1255_v6  ;;  %v1263_v13 = vpack.c.bf16 %v380_v12, %v379_v11  ;;  %v381_v14 = vld [vmem:[%s1981_s2 + $0x40] sm:$0xff]  ;;  %v382_v15 = vld [vmem:[%s1981_s2 + $0x48] sm:$0xff] }
  0x4c   : > { %s1747_s18 = scalar_lea.vmem %s361_s8, %s1137_s25  ;;  %v1267_v16 = vpack.c.bf16 %v382_v15, %v381_v14  ;;  %v383_v17 = vld [vmem:[%s1981_s2 + $0x50] sm:$0xff]  ;;  %v384_v18 = vld [vmem:[%s1981_s2 + $0x58] sm:$0xff]  ;;  %v385_v20 = vld [vmem:[%s1981_s2 + $0x60] sm:$0xff]  ;;  %vm511_vm2 = vcmask 64512   ;;  %p1119_p8 = scmp.ne.s32.totalorder %s1504_s30, 0 }
  0x4d   : > { %v367_v10 = vld [vmem:[%s1747_s18] sm:$0xff]  ;;  %v1271_v19 = vpack.c.bf16 %v384_v18, %v383_v17  ;;  %v386_v21 = vld [vmem:[%s1981_s2 + $0x68] sm:$0xff]  ;;  %v387_v23 = vld [vmem:[%s1981_s2 + $0x70] sm:$0xff]  ;;  %v1526_v50 = vmov (!%p1119_p8), 0.0  }
  0x4e   : > { %1210 = vmatprep.mubr.f32.mxu0 %v367_v10  ;;  %1258 = vmatpush3.bf16.msra.mxu0 %v1255_v6  ;;  %v1275_v22 = vpack.c.bf16 %v386_v21, %v385_v20  ;;  %v388_v24 = vld [vmem:[%s1981_s2 + $0x78] sm:$0xff]  ;;  %v368_v26 = vld [vmem:[%s1747_s18 + $0x8] sm:$0xff]  ;;  %v369_v27 = vld [vmem:[%s1747_s18 + $0x10] sm:$0xff] }
  0x4f   : > { %1260 = vmatprep.subr.bf16.mxu0 %v1259_v9  ;;  %v1279_v25 = vpack.c.bf16 %v388_v24, %v387_v23  ;;  %v370_v28 = vld [vmem:[%s1747_s18 + $0x18] sm:$0xff]  ;;  %v371_v29 = vld [vmem:[%s1747_s18 + $0x20] sm:$0xff]  ;;  %v372_v30 = vld [vmem:[%s1747_s18 + $0x28] sm:$0xff]  ;;  %s2008_s18 = sshll.u32 %s1709_s15, 5 }
  0x50   : > { %v1118_v31 = vld [vmem:[%s1982_s3] ss:$0 sm:$0xff]  ;;  %s1796_s17 = scalar_lea.vmem [#allocation7], %s2008_s18 }
  0x52   : > { %1262 = vmatpush3.bf16.msra.mxu0 %v1259_v9 }
  0x53   : > { %1264 = vmatprep.subr.bf16.mxu0 %v1263_v13 }
  0x56   : > { %1266 = vmatpush3.bf16.msra.mxu0 %v1263_v13 }
  0x57   : > { %1268 = vmatprep.subr.bf16.mxu0 %v1267_v16 }
  0x5a   : > { %1270 = vmatpush3.bf16.msra.mxu0 %v1267_v16 }
  0x5b   : > { %1272 = vmatprep.subr.bf16.mxu0 %v1271_v19 }
  0x5e   : > { %1274 = vmatpush3.bf16.msra.mxu0 %v1271_v19 }
  0x5f   : > { %1276 = vmatprep.subr.bf16.mxu0 %v1275_v22 }
  0x62   : > { %1278 = vmatpush3.bf16.msra.mxu0 %v1275_v22 }
  0x63   : > { %1280 = vmatprep.subr.bf16.mxu0 %v1279_v25 }
  0x66   : > { %1282 = vmatpush3.bf16.msra.mxu0 %v1279_v25 }
  0x69   : > { %1211 = vmatmul.mubr.f32.vlgmr.msra.gmra.mrb[0].mxu0 %v368_v26 }
  0x6a   : > { %1213 = vmatprep.mubr.f32.mxu0 %v369_v27 }
  0x6d   : > { %1214 = vmatmul.mubr.f32.gmra.mrb[2].mxu0 %v370_v28 }
  0x6e   : > { %1216 = vmatprep.mubr.f32.mxu0 %v371_v29 }
  0x71   : > { %1217 = vmatmul.mubr.f32.gmra.mrb[4].mxu0 %v372_v30 }
 0x13c   : > { %v1212_v32 = vpop.f32.mrb[0].mxu0 }
 0x13d   : > { %v468_v33 = vadd.f32 %v1212_v32, %v1118_v31  ;;  %v462_v34 = vpop.f32.mrb[1].mxu0 }
 0x13e   : > { %v463_v35 = vadd.f32 %v1118_v31, %v462_v34 }
 0x13f   : > { %v492_v36 = vmax.f32 %v468_v33, 0.0 }
 0x140   : > { %v491_v37 = vmax.f32 %v463_v35, 0.0  ;;  %v1215_v38 = vpop.f32.mrb[2].mxu0 }
 0x141   : > { %513 = vst.msk [vmem:[#allocation2 + $0x11] sm:$0xff] %vm511_vm2, %v492_v36  ;;  %v478_v39 = vadd.f32 %v1215_v38, %v1118_v31  ;;  %v472_v40 = vpop.f32.mrb[3].mxu0 }
 0x142   : > { %512 = vst.msk [vmem:[#allocation2 + $0x1] sm:$0xff] %vm511_vm2, %v491_v37  ;;  %v473_v41 = vadd.f32 %v1118_v31, %v472_v40 }
 0x143   : > { %v494_v42 = vmax.f32 %v478_v39, 0.0  ;;  %522 = vst.msk [vmem:[#allocation2] sm:$0xff] (!%p1119_p8), %vm511_vm2, %v1526_v50  ;;  %523 = vst.msk [vmem:[#allocation2 + $0x8] sm:$0xff] (!%p1119_p8), %vm511_vm2, %v1526_v50 }
 0x144   : > { %v493_v43 = vmax.f32 %v473_v41, 0.0  ;;  %v1218_v44 = vpop.f32.mrb[4].mxu0  ;;  %521 = sbr.rel (%p1119_p8) target bundleno = 331 (0x14b), region = 60 }
 0x145   : > { %515 = vst.msk [vmem:[#allocation2 + $0x31] sm:$0xff] %vm511_vm2, %v494_v42  ;;  %v488_v45 = vadd.f32 %v1218_v44, %v1118_v31  ;;  %v482_v46 = vpop.f32.mrb[5].mxu0 }
 0x146   : > { %514 = vst.msk [vmem:[#allocation2 + $0x21] sm:$0xff] %vm511_vm2, %v493_v43  ;;  %v483_v47 = vadd.f32 %v1118_v31, %v482_v46 }
 0x147   : > { %v496_v48 = vmax.f32 %v488_v45, 0.0 }
 0x148   : > { %v495_v49 = vmax.f32 %v483_v47, 0.0 }
 0x149   : > { %517 = vst.msk [vmem:[#allocation2 + $0x51] sm:$0xff] %vm511_vm2, %v496_v48 }
 0x14a   : > { %516 = vst.msk [vmem:[#allocation2 + $0x41] sm:$0xff] %vm511_vm2, %v495_v49 }
 0x14b PF: > { %p1120_p12 = scmp.ne.s32.totalorder %s1504_s30, 1 }
 0x14c   : > { %v1527_v51 = vmov (!%p1120_p12), 0.0  }
 0x14d   : > { %527 = sbr.rel (%p1120_p12) target bundleno = 340 (0x154), region = 64  ;;  %529 = vst.msk [vmem:[#allocation2 + $0x50] sm:$0xff] (!%p1120_p12), %vm511_vm2, %v1527_v51  ;;  %530 = vst.msk [vmem:[#allocation2 + $0x58] sm:$0xff] (!%p1120_p12), %vm511_vm2, %v1527_v51 }
 0x154 PF: > { %v539_v52 = vld [vmem:[#allocation2 + $0x1] sm:$0xff]  ;;  %s1994_s13 = smov 8   ;;  %s1529_s22 = smov 16   ;;  %v590_v54 = vld [vmem:[#allocation2 + $0x10] sm:$0xff]  ;;  %v748_v4 = vld [vmem:[%s1983_s4 + $0x18] sm:$0xff]  ;;  %vm559_vm3 = vcmask 130112  }
 0x155   : > { %v564_v53 = vld [vmem:[#allocation2 + $0x2] sm:$0xff]  ;;  %547 = vrot.lane.b32.xlu0 %v539_v52, %s1994_s13  ;;  %v540_v56 = vld [vmem:[#allocation2 + $0x11] sm:$0xff]  ;;  %536 = vst.msk [vmem:[#allocation3 + $0x8] sm:$0xff] %vm511_vm2, %v590_v54  ;;  %s1530_s19 = smov 24   ;;  %s1531_s27 = smov 32   ;;  %vm584_vm4 = vcmask 195712  }
 0x156   : > { %572 = vrot.lane.b32.xlu1 %v564_v53, %s1529_s22  ;;  %v591_v55 = vld [vmem:[#allocation2 + $0x20] sm:$0xff]  ;;  %v565_v57 = vld [vmem:[#allocation2 + $0x12] sm:$0xff]  ;;  %s1995_s5 = smov 40   ;;  %v746_v0 = vld [vmem:[%s1983_s4 + $0x8] sm:$0xff]  ;;  %s1533_s20 = smov 48   ;;  %vm610_vm5 = vcmask 261312  }
 0x157   : > { %537 = vst.msk [vmem:[#allocation3 + $0x10] sm:$0xff] %vm511_vm2, %v591_v55  ;;  %v592_v58 = vld [vmem:[#allocation2 + $0x30] sm:$0xff]  ;;  %v531_v59 = vld [vmem:[#allocation2] sm:$0xff]  ;;  %v750_v7 = vld [vmem:[%s1983_s4 + $0x28] sm:$0xff]  ;;  %s1535_s16 = smov 64   ;;  %s2009_s7 = smov 40  }
 0x158   : > { %538 = vst.msk [vmem:[#allocation3 + $0x18] sm:$0xff] %vm511_vm2, %v592_v58  ;;  %535 = vst.msk [vmem:[#allocation3] sm:$0xff] %vm511_vm2, %v531_v59  ;;  %v541_v60 = vld [vmem:[#allocation2 + $0x21] sm:$0xff]  ;;  %v542_v61 = vld [vmem:[#allocation2 + $0x31] sm:$0xff]  ;;  %vm635_vm6 = vcmask 326912   ;;  %vm660_vm7 = vcmask 392512  }
 0x159   : > { %549 = vrot.lane.b32.xlu0 %v540_v56, %s1994_s13  ;;  %v566_v62 = vld [vmem:[#allocation2 + $0x22] sm:$0xff]  ;;  %v567_v2 = vld [vmem:[#allocation2 + $0x32] sm:$0xff]  ;;  %vm686_vm8 = vcmask 458112   ;;  %vm711_vm9 = vcmask 523712   ;;  %vm736_vm10 = vcmask 589312   ;;  %vm761_vm11 = vcmask 588800  }
 0x15a   : > { %574 = vrot.lane.b32.xlu1 %v565_v57, %s1529_s22  ;;  %v745_v63 = vld [vmem:[%s1983_s4] sm:$0xff]  ;;  %v747_v3 = vld [vmem:[%s1983_s4 + $0x10] sm:$0xff]  ;;  %v752_v11 = vld [vmem:[%s1983_s4 + $0x38] sm:$0xff]  ;;  %s2011_s8 = sld [smem:[#allocation14_spill]]  ;;  %s1133_s25 = sshll.u32 %s1508_s9, 3 }
 0x15b   : > { %v1283_v1 = vpack.c.bf16 %v746_v0, %v745_v63  ;;  %v1287_v5 = vpack.c.bf16 %v748_v4, %v747_v3  ;;  %v749_v6 = vld [vmem:[%s1983_s4 + $0x20] sm:$0xff]  ;;  %v751_v10 = vld [vmem:[%s1983_s4 + $0x30] sm:$0xff]  ;;  %p2014_p11 = scmp.ne.s32.totalorder %s2005_s21, 0  ;;  %s1536_s14 = smov [#allocation7]  }
 0x15c   : > { %v1291_v8 = vpack.c.bf16 %v750_v7, %v749_v6  ;;  %v593_v9 = vld [vmem:[#allocation2 + $0x40] sm:$0xff]  ;;  %v1295_v12 = vpack.c.bf16 %v752_v11, %v751_v10  ;;  %v669_v16 = vld [vmem:[#allocation2 + $0x50] sm:$0xff]  ;;  %v969_v7 = vld [vmem:[%s1715_s23 + $0x8] sm:$0xff]  ;;  %s1426_s18 = sshll.u32 %s1536_s14, 4  ;;  %s1427_s18 = int_to_ptr.vmem [resolvable:$false] %s1426_s18 }
 0x15d   : > { %598 = vrot.lane.b32.xlu0 %v590_v54, %s1530_s19  ;;  %1284 = vmatprep.subr.bf16.mxu1 %v1283_v1  ;;  %v753_v13 = vld [vmem:[%s1983_s4 + $0x40] sm:$0xff]  ;;  %v694_v17 = vld [vmem:[#allocation2 + $0x51] sm:$0xff] }
 0x15e   : > { %600 = vrot.lane.b32.xlu1 %v591_v55, %s1530_s19  ;;  %1286 = vmatpush3.bf16.msra.mxu1 %v1283_v1  ;;  %v618_v14 = vld [vmem:[#allocation2 + $0x41] sm:$0xff]  ;;  %v719_v18 = vld [vmem:[#allocation2 + $0x52] sm:$0xff] }
 0x15f   : > { %1288 = vmatprep.subr.bf16.mxu1 %v1287_v5  ;;  %v643_v15 = vld [vmem:[#allocation2 + $0x42] sm:$0xff] }
 0x160   : > { %v968_v10 = vld [vmem:[%s1715_s23] sm:$0xff] }
 0x161   : > { %623 = vrot.lane.b32.xlu0 %v540_v56, %s1531_s27 }
 0x162   : > { %551 = vrot.lane.b32.xlu1 %v541_v60, %s1994_s13  ;;  %1290 = vmatpush3.bf16.msra.mxu1 %v1287_v5  ;;  %v1126_v5 = vld [vmem:[%s2011_s8] ss:$0 sm:$0xff]  ;;  %s1428_s8 = scalar_lea.vmem %s1427_s18, 1024 }
 0x163   : > { %1292 = vmatprep.subr.bf16.mxu1 %v1291_v8 }
 0x165   : > { %625 = vrot.lane.b32.xlu0 %v541_v60, %s1531_s27 }
 0x166   : > { %648 = vrot.lane.b32.xlu1 %v565_v57, %s1995_s5  ;;  %1294 = vmatpush3.bf16.msra.mxu1 %v1291_v8 }
 0x167   : > { %1296 = vmatprep.subr.bf16.mxu1 %v1295_v12 }
 0x169   : > { %553 = vrot.lane.b32.xlu0 %v542_v61, %s1994_s13  ;;  %s1534_s13 = smov 56  }
 0x16a   : > { %576 = vrot.lane.b32.xlu1 %v566_v62, %s1529_s22  ;;  %1298 = vmatpush3.bf16.msra.mxu1 %v1295_v12 }
 0x16b   : > { %1235 = vmatprep.subr.mxu1 %v753_v13 }
 0x16d   : > { %650 = vrot.lane.b32.xlu0 %v566_v62, %s1995_s5  ;;  %s1132_s5 = sshll.u32 %s1504_s30, 2  ;;  %s2012_s30 = sld [smem:[#allocation15_spill]] }
 0x16e   : > { %674 = vrot.lane.b32.xlu1 %v591_v55, %s1533_s20  ;;  %1236 = vmatpush3.msra.mxu1 %v753_v13  ;;  %v863_v55 = vld [vmem:[%s1985_s6] sm:$0xff] }
 0x16f   : > { %1243 = vmatprep.subr.mxu1 %v863_v55 }
 0x171   : > { %578 = vrot.lane.b32.xlu0 %v567_v2, %s1529_s22  ;;  %s2010_s22 = sld [smem:[#allocation13_spill]] }
 0x172   : > { %602 = vrot.lane.b32.xlu1 %v592_v58, %s1530_s19 }
 0x175   : > { %676 = vrot.lane.b32.xlu0 %v592_v58, %s1533_s20 }
 0x176   : > { %699 = vrot.lane.b32.xlu1 %v541_v60, %s1534_s13 }
 0x177   : > { %v1121_v56 = vld [vmem:[%s2010_s22] ss:$0 sm:$0xff] }
 0x179   : > { %604 = vrot.lane.b32.xlu0 %v593_v9, %s1530_s19  ;;  %s1000_s19 = sshll.u32 %s1796_s17, 4  ;;  %s1922_s19 = int_to_ptr.vmem [resolvable:$true] %s1000_s19 }
 0x17a   : > { %627 = vrot.lane.b32.xlu1 %v542_v61, %s1531_s27  ;;  %s1422_s22 = scalar_lea.vmem %s1922_s19, 512  ;;  %p1429_p3 = scmp.lt.s32.totalorder %s1922_s19, %s1427_s18 }
 0x17b   : > { %p1423_p0 = scmp.ne.s32.totalorder %s1922_s19, %s1422_s22  ;;  %p1430_p5 = scmp.lt.s32.totalorder %s1428_s8, %s1422_s22 }
 0x17d   : > { %701 = vrot.lane.b32.xlu0 %v542_v61, %s1534_s13  ;;  %p1424_p13 = pnand %p1423_p0, %p2014_p11  ;;  %p1431_p6 = por %p1430_p5, %p1429_p3 }
 0x17e   : > { %724 = vrot.lane.b32.xlu1 %v566_v62, %s1535_s16 }
 0x17f   : > { %p1425_p1 = pneg %p1424_p13 }
 0x181   : > { %629 = vrot.lane.b32.xlu0 %v618_v14, %s1531_s27  ;;  %p1432_p7 = pnand %p1431_p6, %p1425_p1 }
 0x182   : > { %652 = vrot.lane.b32.xlu1 %v567_v2, %s2009_s7 }
 0x185   : > { %726 = vrot.lane.b32.xlu0 %v567_v2, %s1535_s16 }
 0x186   : > { %654 = vrot.lane.b32.xlu1 %v643_v15, %s2009_s7 }
 0x189   : > { %678 = vrot.lane.b32.xlu0 %v593_v9, %s1533_s20 }
 0x18a   : > { %680 = vrot.lane.b32.xlu1 %v669_v16, %s1533_s20 }
 0x18d   : > { %703 = vrot.lane.b32.xlu0 %v618_v14, %s1534_s13 }
 0x18e   : > { %705 = vrot.lane.b32.xlu1 %v694_v17, %s1534_s13  ;;  %v971_v17 = vld [vmem:[%s1715_s23 + $0x18] sm:$0xff]  ;;  %s2013_s13 = smov %s2012_s30 }
 0x191   : > { %728 = vrot.lane.b32.xlu0 %v643_v15, %s1535_s16 }
 0x192   : > { %730 = vrot.lane.b32.xlu1 %v719_v18, %s1535_s16  ;;  %s997_s16 = sadd.s32 %s1133_s25, %s1132_s5 }
 0x193   : > { %s1134_s7 = sshll.u32 %s997_s16, 7 }
 0x194   : > { %s1920_s9 = scalar_lea.hbm %s2012_s30, %s1134_s7 }
 0x1c7   : > { %v548_v19 = vpop.permute.xlu0 %547 }
 0x1c8   : > { %v573_v20 = vpop.permute.xlu1 %572  ;;  %560 = vst.msk [vmem:[#allocation3] sm:$0xff] %vm559_vm3, %v548_v19 }
 0x1c9   : > { %585 = vst.msk [vmem:[#allocation3] sm:$0xff] %vm584_vm4, %v573_v20  ;;  %v970_v20 = vld [vmem:[%s1715_s23 + $0x10] sm:$0xff]  ;;  %s985_s23 = scalar_lea.sflag [#allocation6], %s1709_s15 }
 0x1cb   : > { %v550_v21 = vpop.permute.xlu0 %549 }
 0x1cc   : > { %v575_v22 = vpop.permute.xlu1 %574  ;;  %561 = vst.msk [vmem:[#allocation3 + $0x8] sm:$0xff] %vm559_vm3, %v550_v21 }
 0x1cd   : > { %586 = vst.msk [vmem:[#allocation3 + $0x8] sm:$0xff] %vm584_vm4, %v575_v22 }
 0x1cf   : > { %v599_v23 = vpop.permute.xlu0 %598 }
 0x1d0   : > { %v601_v24 = vpop.permute.xlu1 %600  ;;  %611 = vst.msk [vmem:[#allocation3] sm:$0xff] %vm610_vm5, %v599_v23 }
 0x1d1   : > { %612 = vst.msk [vmem:[#allocation3 + $0x8] sm:$0xff] %vm610_vm5, %v601_v24 }
 0x1d3   : > { %v624_v25 = vpop.permute.xlu0 %623 }
 0x1d4   : > { %v552_v26 = vpop.permute.xlu1 %551  ;;  %636 = vst.msk [vmem:[#allocation3] sm:$0xff] %vm635_vm6, %v624_v25 }
 0x1d5   : > { %562 = vst.msk [vmem:[#allocation3 + $0x10] sm:$0xff] %vm559_vm3, %v552_v26 }
 0x1d7   : > { %v626_v27 = vpop.permute.xlu0 %625 }
 0x1d8   : > { %v649_v28 = vpop.permute.xlu1 %648  ;;  %637 = vst.msk [vmem:[#allocation3 + $0x8] sm:$0xff] %vm635_vm6, %v626_v27 }
 0x1d9   : > { %661 = vst.msk [vmem:[#allocation3] sm:$0xff] %vm660_vm7, %v649_v28 }
 0x1db   : > { %v554_v29 = vpop.permute.xlu0 %553 }
 0x1dc   : > { %v577_v30 = vpop.permute.xlu1 %576  ;;  %563 = vst.msk [vmem:[#allocation3 + $0x18] sm:$0xff] %vm559_vm3, %v554_v29 }
 0x1dd   : > { %587 = vst.msk [vmem:[#allocation3 + $0x10] sm:$0xff] %vm584_vm4, %v577_v30 }
 0x1df   : > { %v651_v31 = vpop.permute.xlu0 %650 }
 0x1e0   : > { %v675_v32 = vpop.permute.xlu1 %674  ;;  %662 = vst.msk [vmem:[#allocation3 + $0x8] sm:$0xff] %vm660_vm7, %v651_v31 }
 0x1e1   : > { %687 = vst.msk [vmem:[#allocation3] sm:$0xff] %vm686_vm8, %v675_v32 }
 0x1e3   : > { %v579_v33 = vpop.permute.xlu0 %578 }
 0x1e4   : > { %v603_v34 = vpop.permute.xlu1 %602  ;;  %588 = vst.msk [vmem:[#allocation3 + $0x18] sm:$0xff] %vm584_vm4, %v579_v33 }
 0x1e5   : > { %613 = vst.msk [vmem:[#allocation3 + $0x10] sm:$0xff] %vm610_vm5, %v603_v34 }
 0x1e7   : > { %v677_v35 = vpop.permute.xlu0 %676 }
 0x1e8   : > { %v700_v36 = vpop.permute.xlu1 %699  ;;  %688 = vst.msk [vmem:[#allocation3 + $0x8] sm:$0xff] %vm686_vm8, %v677_v35 }
 0x1e9   : > { %712 = vst.msk [vmem:[#allocation3] sm:$0xff] %vm711_vm9, %v700_v36 }
 0x1eb   : > { %v605_v37 = vpop.permute.xlu0 %604 }
 0x1ec   : > { %v628_v38 = vpop.permute.xlu1 %627  ;;  %614 = vst.msk [vmem:[#allocation3 + $0x18] sm:$0xff] %vm610_vm5, %v605_v37 }
 0x1ed   : > { %638 = vst.msk [vmem:[#allocation3 + $0x10] sm:$0xff] %vm635_vm6, %v628_v38 }
 0x1ef   : > { %v702_v39 = vpop.permute.xlu0 %701 }
 0x1f0   : > { %v725_v40 = vpop.permute.xlu1 %724  ;;  %713 = vst.msk [vmem:[#allocation3 + $0x8] sm:$0xff] %vm711_vm9, %v702_v39 }
 0x1f1   : > { %737 = vst.msk [vmem:[#allocation3] sm:$0xff] %vm736_vm10, %v725_v40 }
 0x1f3   : > { %v630_v41 = vpop.permute.xlu0 %629 }
 0x1f4   : > { %v653_v42 = vpop.permute.xlu1 %652  ;;  %639 = vst.msk [vmem:[#allocation3 + $0x18] sm:$0xff] %vm635_vm6, %v630_v41 }
 0x1f5   : > { %663 = vst.msk [vmem:[#allocation3 + $0x10] sm:$0xff] %vm660_vm7, %v653_v42 }
 0x1f7   : > { %v727_v43 = vpop.permute.xlu0 %726 }
 0x1f8   : > { %v655_v44 = vpop.permute.xlu1 %654  ;;  %v741_v45 = vld [vmem:[#allocation3] sm:$0xff]  ;;  %738 = vst.msk [vmem:[#allocation3 + $0x8] sm:$0xff] %vm736_vm10, %v727_v43 }
 0x1f9   : > { %664 = vst.msk [vmem:[#allocation3 + $0x18] sm:$0xff] %vm660_vm7, %v655_v44  ;;  %1237 = vmatprep.mubr.msk.f32.mxu1 %vm761_vm11, %v741_v45 }
 0x1fb   : > { %v679_v46 = vpop.permute.xlu0 %678 }
 0x1fc   : > { %v681_v47 = vpop.permute.xlu1 %680  ;;  %689 = vst.msk [vmem:[#allocation3 + $0x10] sm:$0xff] %vm686_vm8, %v679_v46 }
 0x1fd   : > { %690 = vst.msk [vmem:[#allocation3 + $0x18] sm:$0xff] %vm686_vm8, %v681_v47 }
 0x1ff   : > { %v704_v48 = vpop.permute.xlu0 %703  ;;  %v742_v50 = vld [vmem:[#allocation3 + $0x8] sm:$0xff] }
 0x200   : > { %v706_v49 = vpop.permute.xlu1 %705  ;;  %714 = vst.msk [vmem:[#allocation3 + $0x10] sm:$0xff] %vm711_vm9, %v704_v48  ;;  %1238 = vmatmul.mubr.msk.f32.vlgmr.msra.gmra.mrb[0].mxu1 %vm761_vm11, %v742_v50 }
 0x201   : > { %715 = vst.msk [vmem:[#allocation3 + $0x18] sm:$0xff] %vm711_vm9, %v706_v49  ;;  %1244 = vmatpush3.msra.mxu1 %v863_v55 }
 0x203   : > { %v729_v51 = vpop.permute.xlu0 %728 }
 0x204   : > { %v731_v52 = vpop.permute.xlu1 %730  ;;  %739 = vst.msk [vmem:[#allocation3 + $0x10] sm:$0xff] %vm736_vm10, %v729_v51 }
 0x205   : > { %740 = vst.msk [vmem:[#allocation3 + $0x18] sm:$0xff] %vm736_vm10, %v731_v52 }
 0x20b   : > { %v743_v53 = vld [vmem:[#allocation3 + $0x10] sm:$0xff] }
 0x20c   : > { %v744_v54 = vld [vmem:[#allocation3 + $0x18] sm:$0xff]  ;;  %1240 = vmatprep.mubr.msk.f32.mxu1 %vm761_vm11, %v743_v53 }
 0x20d   : > { %1241 = vmatmul.mubr.msk.f32.gmra.mrb[2].mxu1 %vm761_vm11, %v744_v54 }
 0x2d3   : > { %v1239_v57 = vpop.f32.mrb[0].mxu1 }
 0x2d4   : > { %v846_v58 = vadd.f32 %v1239_v57, %v1121_v56  ;;  %v840_v59 = vpop.f32.mrb[1].mxu1 }
 0x2d5   : > { %v841_v60 = vadd.f32 %v1121_v56, %v840_v59 }
 0x2d6   : > { %v860_v62 = vmax.f32 %v846_v58, 0.0 }
 0x2d7   : > { %v859_v61 = vmax.f32 %v841_v60, 0.0 }
 0x2d9   : > { %1245 = vmatprep.mubr.msk.f32.mxu1 %vm511_vm2, %v859_v61 }
 0x2da   : > { %1246 = vmatmul.mubr.msk.f32.vlgmr.msra.gmra.mrb[4].mxu1 %vm511_vm2, %v860_v62 }
 0x2e0   : > { %v1242_v63 = vpop.f32.mrb[2].mxu1 }
 0x2e1   : > { %v856_v0 = vadd.f32 %v1242_v63, %v1121_v56  ;;  %v850_v1 = vpop.f32.mrb[3].mxu1 }
 0x2e2   : > { %v851_v2 = vadd.f32 %v1121_v56, %v850_v1 }
 0x2e3   : > { %v862_v4 = vmax.f32 %v856_v0, 0.0 }
 0x2e4   : > { %v861_v3 = vmax.f32 %v851_v2, 0.0 }
 0x2e6   : > { %1248 = vmatprep.mubr.msk.f32.mxu1 %vm511_vm2, %v861_v3 }
 0x2e7   : > { %1249 = vmatmul.mubr.msk.f32.gmra.mrb[6].mxu1 %vm511_vm2, %v862_v4 }
 0x3ad   : > { %v1247_v6 = vpop.f32.mrb[4].mxu1 }
 0x3ae   : > { %v955_v8 = vadd.f32 %v1247_v6, %v1126_v5  ;;  %v949_v9 = vpop.f32.mrb[5].mxu1 }
 0x3af   : > { %v950_v11 = vadd.f32 %v1126_v5, %v949_v9 }
 0x3b0   : > { %v973_v12 = vadd.f32 %v969_v7, %v955_v8 }
 0x3b1   : > { %v972_v13 = vadd.f32 %v968_v10, %v950_v11 }
 0x3b2   : > { %v977_v14 = vmax.f32 %v973_v12, 0.0 }
 0x3b3   : > { %v976_v15 = vmax.f32 %v972_v13, 0.0 }
 0x3b4   : > { %981 = vst [vmem:[%s1796_s17 + $0x8] sm:$0xff] %v977_v14 }
 0x3b5   : > { %980 = vst [vmem:[%s1796_s17] sm:$0xff] %v976_v15 }
 0x3ba   : > { %v1250_v16 = vpop.f32.mrb[6].mxu1 }
 0x3bb   : > { %v965_v18 = vadd.f32 %v1250_v16, %v1126_v5  ;;  %v959_v19 = vpop.f32.mrb[7].mxu1 }
 0x3bc   : > { %v960_v21 = vadd.f32 %v1126_v5, %v959_v19 }
 0x3bd   : > { %v975_v22 = vadd.f32 %v971_v17, %v965_v18 }
 0x3be   : > { %v974_v23 = vadd.f32 %v970_v20, %v960_v21 }
 0x3bf   : > { %v979_v24 = vmax.f32 %v975_v22, 0.0 }
 0x3c0   : > { %v978_v25 = vmax.f32 %v974_v23, 0.0 }
 0x3c1   : > { %983 = vst [vmem:[%s1796_s17 + $0x18] sm:$0xff] %v979_v24 }
 0x3c2   : > { %982 = vst [vmem:[%s1796_s17 + $0x10] sm:$0xff] %v978_v25 }
 0x3c3   : > { %1435 = shalt.err (!%p1432_p7)
}
 0x3c4   : > { %s1436_s17 = scalar_lea.hbm %s1920_s9, 512  ;;  %s1440_s16 = scalar_lea.hbm %s2013_s13, 2048 }
 0x3c5   : > { %p1437_p2 = scmp.ne.s32.totalorder %s1920_s9, %s1436_s17  ;;  %p1441_p9 = scmp.lt.u32.totalorder %s1920_s9, %s2013_s13 }
 0x3c6   : > { %p1442_p8 = scmp.lt.u32.totalorder %s1440_s16, %s1436_s17  ;;  %p1444_p0 = scmp.lt.u32.totalorder %s1436_s17, %s1920_s9 }
 0x3c7   : > { %p1438_p4 = pnand %p1437_p2, %p2014_p11 }
 0x3c8   : > { %p1443_p12 = por %p1442_p8, %p1441_p9 }
 0x3c9   : > { %p1439_p10 = pneg %p1438_p4 }
 0x3ca   : > { %p1445_p13 = por %p1444_p0, %p1443_p12 }
 0x3cc   : > { %p1446_p1 = pnand %p1445_p13, %p1439_p10 }
 0x3ce   : > { %1449 = shalt.err (!%p1446_p1)
}
 0x3cf   : > { %s1537_s20 = smov 128   ;;  %s2015_s30 = smov 8  }
 0x3d0   : > { %1302 = dma.vmem_to_hbm [thread:$0]  (%p2014_p11), %s1922_s19, 512, %s1920_s9, %s985_s23, %s1537_s20, %s1537_s20, %s2015_s30  }
 0x3d1 PF: > { %s2016_s22 = sld [smem:[#allocation10_spill]]  ;;  %p1313_p3 = scmp.ge.s32.totalorder %s1520_s12, 2 }
 0x3d2   : > { %p2017_p5 = scmp.ne.s32.totalorder %s2006_s24, 0 }
 0x3d4   : > { %p1309_p6 = pnand %p1313_p3, %p2017_p5 }
 0x3d7   : > { %s1015_s14 = sand.u32 1, %s2016_s22  }
 0x3d8   : > { %s1016_s18 = scalar_lea.sflag [#allocation6], %s1015_s14 }
 0x3d9   : > { %1487 = dma.done.wait (!%p1309_p6), %s1016_s18, 512  }
 0x3da   : > { %1489 = vsyncadd (!%p1309_p6), %s1016_s18, 4294966784  ;;  %s24_s12 = sadd.s32 1, %s1520_s12   ;;  %s2018_s21 = sld [smem:[#allocation11_spill]] }
 0x3db   : > { %p21_p7 = scmp.ge.s32.totalorder %s24_s12, 6   ;;  %s2019_s15 = sld [smem:[#allocation12_spill]] }
 0x3dc   : > { %s2020_s27 = smov %s1496_s28  ;;  %s2021_s28 = smov %s1500_s29 }
 0x3dd   : > { %s2022_s29 = smov %s1661_s26  ;;  %s2023_s30 = smov %s1512_s10 }
 0x3de   : > { %s2024_s9 = smov %s1516_s11  ;;  %23 = sbr.rel (!%p21_p7) target bundleno = 11 (0xb), region = 112 }
 0x3e0   : > { %s2025_s10 = smov %s2018_s21 }
 0x3e1   : > { %s2026_s11 = smov %s2019_s15 }
 0x3e5   :  { %1021 = vsyncpa [#allocation5], 1 }
 0x3e6   :  { %1023 = vsyncpa [#allocation5 + $0x1], 1 }
 0x3e7   :  { %1024 = vsyncpa [#allocation6], 1 }
 0x3e8   :  { %1026 = vsyncpa [#allocation6 + $0x1], 1 }

</bundles_post_ra>
